<compile_context>
chip_gen: v7x
topology: tpu7x:2x2x1
jax: 0.10.0
libtpu: 0.0.40
codegen_flags: <defaults>
</compile_context>

<pallas_src>
import jax
import jax.numpy as jnp
import numpy as np
from jax.experimental import pallas as pl
from jax.experimental.pallas import tpu as pltpu


def masked_mlp_kernel(xT_ref, w1T_ref, b1T_ref, w2T_ref, b2T_ref, oT_ref):
    """Transposed masked-MLP forward; batch on the lane (last) axis.

    xT_ref : (n_in,     TB)      input tile (batch on lanes)
    w1T_ref: (n_hidden, n_in)    pre-masked W1^T          (grid-invariant)
    b1T_ref: (n_hidden, 1)                                 (grid-invariant)
    w2T_ref: (n_out,    n_hidden) pre-masked W2^T          (grid-invariant)
    b2T_ref: (n_out, 1)                                    (grid-invariant)
    oT_ref : (n_out, TB)         lane-dense output tile
    """
    xT = xT_ref[...]                                            # (n_in, TB)

    # --- layer1: masked linear + ReLU (h^T = W1m^T @ x^T + b1^T) ----------
    h = jnp.dot(w1T_ref[...], xT, preferred_element_type=jnp.float32)
    h = jnp.maximum(h + b1T_ref[...], 0.0)                      # (n_hidden, TB)

    # --- layer2: masked linear (logits^T = W2m^T @ h^T + b2^T) ------------
    logits = jnp.dot(w2T_ref[...], h, preferred_element_type=jnp.float32)
    logits = logits + b2T_ref[...]                              # (n_out, TB)

    # --- softmax over the class axis (axis 0 in transposed layout) --------
    m = jnp.max(logits, axis=0, keepdims=True)                  # sublane reduce (XLU)
    e = jnp.exp(logits - m)                                     # EUP
    s = jnp.sum(e, axis=0, keepdims=True)                       # sublane reduce (XLU)
    # reciprocal on the EUP slot; approx=False keeps 1e-5 accuracy.
    oT_ref[...] = (e * pl.reciprocal(s, approx=False)).astype(oT_ref.dtype)


def masked_extractor_forward(x, w1, mask1, b1, w2, mask2, b2, *, tile_b=128):
    """y = softmax(relu(x @ (w1*mask1) + b1) @ (w2*mask2) + b2, -1)."""
    B, n_in = x.shape
    n_hidden = w1.shape[1]
    n_out = w2.shape[1]

    # --- one-time mask folding (grid-invariant, bit-exact) ----------------
    w1mT = (w1 * mask1).T                       # (n_hidden, n_in)
    w2mT = (w2 * mask2).T                       # (n_out, n_hidden)
    b1T = jnp.reshape(b1, (1, n_hidden)).T      # (n_hidden, 1)
    b2T = jnp.reshape(b2, (1, n_out)).T         # (n_out, 1)

    # --- pad batch to a multiple of tile_b, put batch on the lane axis ----
    n_tiles = pl.cdiv(B, tile_b)
    B_pad = n_tiles * tile_b
    xT = x.T                                    # (n_in, B)
    if B_pad != B:
        xT = jnp.pad(xT, ((0, 0), (0, B_pad - B)))

    # Grid-invariant operands: constant block index -> resident in VMEM.
    full = lambda shape: pl.BlockSpec(shape, lambda i: (0, 0))

    oT = pl.pallas_call(
        masked_mlp_kernel,
        out_shape=jax.ShapeDtypeStruct((n_out, B_pad), jnp.float32),
        grid_spec=pltpu.PrefetchScalarGridSpec(
            num_scalar_prefetch=0,
            grid=(n_tiles,),
            in_specs=[
                pl.BlockSpec((n_in, tile_b), lambda i: (0, i)),   # x^T tile
                full((n_hidden, n_in)),                           # W1m^T
                full((n_hidden, 1)),                              # b1^T
                full((n_out, n_hidden)),                          # W2m^T
                full((n_out, 1)),                                 # b2^T
            ],
            out_specs=pl.BlockSpec((n_out, tile_b), lambda i: (0, i)),
        ),
        compiler_params=pltpu.CompilerParams(
            dimension_semantics=("parallel",)),
    )(xT, w1mT, b1T, w2mT, b2T)

    return oT.T[:B]                             # back to (B, n_out)


def reference_forward(x, w1, mask1, b1, w2, mask2, b2):
    h = jax.nn.relu(x @ (w1 * mask1) + b1)
    return jax.nn.softmax(h @ (w2 * mask2) + b2, axis=-1)


if __name__ == "__main__":
    # ---- deterministic setup ------------------------------------------------
    n_in, n_hidden, n_out = 16, 32, 8
    B = 200          # not a multiple of tile_b -> exercises tail padding;
                     # pads to 256 -> 2 grid steps (keeps both v7x TCs busy)
    n_total = n_in + n_hidden + n_out

    key = jax.random.PRNGKey(0)
    k_adj, k_x, k_w1, k_b1, k_w2, k_b2 = jax.random.split(key, 6)

    # Synthetic adjacency mask (random DAG-style 0/1 mask).
    adj_mask = (jax.random.uniform(k_adj, (n_total, n_total)) < 0.5).astype(jnp.float32)

    mask1 = adj_mask[:n_in, n_in:n_in + n_hidden]                    # (n_in, n_hidden)
    mask2 = adj_mask[n_in:n_in + n_hidden, n_in + n_hidden:]         # (n_hidden, n_out)

    # Deterministic synthetic parameters (not a checkpoint load).
    w1 = jax.random.normal(k_w1, (n_in, n_hidden), jnp.float32) * 0.1
    b1 = jax.random.normal(k_b1, (1, n_hidden), jnp.float32) * 0.01
    w2 = jax.random.normal(k_w2, (n_hidden, n_out), jnp.float32) * 0.1
    b2 = jax.random.normal(k_b2, (1, n_out), jnp.float32) * 0.01

    x = jax.random.normal(k_x, (B, n_in), jnp.float32)

    # ---- run kernel ---------------------------------------------------------
    out = masked_extractor_forward(x, w1, mask1, b1, w2, mask2, b2, tile_b=128)
    out = jax.block_until_ready(out)

    # sanity check against pure-JAX reference
    ref = reference_forward(x, w1, mask1, b1, w2, mask2, b2)
    np.testing.assert_allclose(np.asarray(out), np.asarray(ref), rtol=1e-5, atol=1e-5)

    print("KERNEL_OK")
</pallas_src>

<mosaic_0001>
module attributes {stable_mosaic.version = 11 : i64} {
  func.func @masked_mlp_kernel(%arg0: i32, %arg1: memref<16x128xf32, #tpu.memory_space<vmem>>, %arg2: memref<32x16xf32, #tpu.memory_space<vmem>>, %arg3: memref<32x1xf32, #tpu.memory_space<vmem>>, %arg4: memref<8x32xf32, #tpu.memory_space<vmem>>, %arg5: memref<8x1xf32, #tpu.memory_space<vmem>>, %arg6: memref<8x128xf32, #tpu.memory_space<vmem>>) attributes {dimension_semantics = [#tpu.dimension_semantics<parallel>], iteration_bounds = array<i64: 2>, scalar_prefetch = 0 : i64, scratch_operands = 0 : i64, tpu.core_type = #tpu.core_type<tc>, window_params = [{transform_indices = @transform_0, window_bounds = array<i64: 16, 128>}, {pipeline_mode = #tpu.pipeline_mode<synchronous>, transform_indices = @transform_1, window_bounds = array<i64: 32, 16>}, {pipeline_mode = #tpu.pipeline_mode<synchronous>, transform_indices = @transform_2, window_bounds = array<i64: 32, 1>}, {pipeline_mode = #tpu.pipeline_mode<synchronous>, transform_indices = @transform_3, window_bounds = array<i64: 8, 32>}, {pipeline_mode = #tpu.pipeline_mode<synchronous>, transform_indices = @transform_4, window_bounds = array<i64: 8, 1>}, {transform_indices = @transform_5, window_bounds = array<i64: 8, 128>}]} {
    %c0 = arith.constant 0 : index
    %c0_0 = arith.constant 0 : index
    %0 = vector.load %arg1[%c0, %c0_0] : memref<16x128xf32, #tpu.memory_space<vmem>>, vector<16x128xf32>
    %c0_1 = arith.constant 0 : index
    %c0_2 = arith.constant 0 : index
    %1 = vector.load %arg2[%c0_1, %c0_2] : memref<32x16xf32, #tpu.memory_space<vmem>>, vector<32x16xf32>
    %cst = arith.constant dense<0.000000e+00> : vector<32x128xf32>
    %2 = tpu.matmul %1, %0, %cst {dimension_numbers = #tpu.dot_dimension_numbers<[1], [0], [0], [1], [0, 0, 1, 1], [], []>} : vector<32x16xf32>, vector<16x128xf32>, vector<32x128xf32> -> vector<32x128xf32>
    %c0_3 = arith.constant 0 : index
    %c0_4 = arith.constant 0 : index
    %3 = vector.load %arg3[%c0_3, %c0_4] : memref<32x1xf32, #tpu.memory_space<vmem>>, vector<32x1xf32>
    %4 = vector.broadcast %3 : vector<32x1xf32> to vector<32x128xf32>
    %5 = arith.addf %2, %4 : vector<32x128xf32>
    %cst_5 = arith.constant 0.000000e+00 : f32
    %6 = vector.broadcast %cst_5 : f32 to vector<32x128xf32>
    %7 = arith.maximumf %5, %6 : vector<32x128xf32>
    %c0_6 = arith.constant 0 : index
    %c0_7 = arith.constant 0 : index
    %8 = vector.load %arg4[%c0_6, %c0_7] : memref<8x32xf32, #tpu.memory_space<vmem>>, vector<8x32xf32>
    %cst_8 = arith.constant dense<0.000000e+00> : vector<8x128xf32>
    %9 = tpu.matmul %8, %7, %cst_8 {dimension_numbers = #tpu.dot_dimension_numbers<[1], [0], [0], [1], [0, 0, 1, 1], [], []>} : vector<8x32xf32>, vector<32x128xf32>, vector<8x128xf32> -> vector<8x128xf32>
    %c0_9 = arith.constant 0 : index
    %c0_10 = arith.constant 0 : index
    %10 = vector.load %arg5[%c0_9, %c0_10] : memref<8x1xf32, #tpu.memory_space<vmem>>, vector<8x1xf32>
    %11 = vector.broadcast %10 : vector<8x1xf32> to vector<8x128xf32>
    %12 = arith.addf %9, %11 : vector<8x128xf32>
    %cst_11 = arith.constant dense<0xFF800000> : vector<128xf32>
    %13 = vector.multi_reduction <maximumf>, %12, %cst_11 [0] : vector<8x128xf32> to vector<128xf32>
    %14 = vector.shape_cast %13 : vector<128xf32> to vector<1x128xf32>
    %15 = vector.broadcast %14 : vector<1x128xf32> to vector<8x128xf32>
    %16 = arith.subf %12, %15 : vector<8x128xf32>
    %17 = math.exp %16 : vector<8x128xf32>
    %cst_12 = arith.constant dense<0.000000e+00> : vector<128xf32>
    %18 = vector.multi_reduction <add>, %17, %cst_12 [0] : vector<8x128xf32> to vector<128xf32>
    %19 = vector.shape_cast %18 : vector<128xf32> to vector<1x128xf32>
    %20 = tpu.reciprocal %19 : vector<1x128xf32> -> vector<1x128xf32>
    %21 = vector.broadcast %20 : vector<1x128xf32> to vector<8x128xf32>
    %22 = arith.mulf %17, %21 : vector<8x128xf32>
    %c0_13 = arith.constant 0 : index
    %c0_14 = arith.constant 0 : index
    %23 = vector.load %arg6[%c0_13, %c0_14] : memref<8x128xf32, #tpu.memory_space<vmem>>, vector<8x128xf32>
    tpu.vector_store %arg6[%c0_13, %c0_14], %22 {strides = array<i32>} : memref<8x128xf32, #tpu.memory_space<vmem>>, vector<8x128xf32>,
    return
  }
  func.func @transform_0(%arg0: i32) -> (i32, i32) {
    %c0_i32 = arith.constant 0 : i32
    %c0_i32_0 = arith.constant 0 : i32
    return %c0_i32, %arg0 : i32, i32
  }
  func.func @transform_1(%arg0: i32) -> (i32, i32) {
    %c0_i32 = arith.constant 0 : i32
    %c0_i32_0 = arith.constant 0 : i32
    %c0_i32_1 = arith.constant 0 : i32
    return %c0_i32, %c0_i32_0 : i32, i32
  }
  func.func @transform_2(%arg0: i32) -> (i32, i32) {
    %c0_i32 = arith.constant 0 : i32
    %c0_i32_0 = arith.constant 0 : i32
    %c0_i32_1 = arith.constant 0 : i32
    return %c0_i32, %c0_i32_0 : i32, i32
  }
  func.func @transform_3(%arg0: i32) -> (i32, i32) {
    %c0_i32 = arith.constant 0 : i32
    %c0_i32_0 = arith.constant 0 : i32
    %c0_i32_1 = arith.constant 0 : i32
    return %c0_i32, %c0_i32_0 : i32, i32
  }
  func.func @transform_4(%arg0: i32) -> (i32, i32) {
    %c0_i32 = arith.constant 0 : i32
    %c0_i32_0 = arith.constant 0 : i32
    %c0_i32_1 = arith.constant 0 : i32
    return %c0_i32, %c0_i32_0 : i32, i32
  }
  func.func @transform_5(%arg0: i32) -> (i32, i32) {
    %c0_i32 = arith.constant 0 : i32
    %c0_i32_0 = arith.constant 0 : i32
    return %c0_i32, %arg0 : i32, i32
  }
}

</mosaic_0001>

<bundles_post_ra>
// kernel: tpu_custom_call.1
= control target key start
LH: loop header
LB: loop body
LE: loop exit
PB: predicated region body
PF: predicated region fallthrough
CT: control target
= control target key end

     0   :  { %10 = vsyncpa [#allocation4], 0  ;;  %s922_s0 = inlined_call_operand.vmem [shape: f32[16,256], index: 0, kind: input, shape index: {}]   ;;  %s923_s1 = inlined_call_operand.vmem [shape: f32[32,16], index: 1, kind: input, shape index: {}]   ;;  %s924_s2 = inlined_call_operand.vmem [shape: f32[32,1], index: 2, kind: input, shape index: {}]   ;;  %s925_s3 = inlined_call_operand.vmem [shape: f32[8,32], index: 3, kind: input, shape index: {}]   ;;  %s926_s4 = inlined_call_operand.vmem [shape: f32[8,1], index: 4, kind: input, shape index: {}]   ;;  %s927_s5 = inlined_call_operand.hbm [shape: f32[8,256], index: 5, kind: output, shape index: {}]  }
   0x1   :  { %12 = vsyncpa [#allocation4 + $0x1], 0  ;;  %s778_s18 = smov 0   ;;  %s780_s19 = smov 0  }
   0x2   :  { %s782_s20 = smov 0   ;;  %s784_s21 = smov 0  }
   0x3 LB: > { %s570_s22 = sadd.s32 4294967295, %s741_s21   ;;  %s571_s23 = sadd.s32 4294967294, %s741_s21   ;;  %s741_s21 = sphi %s784_s21, %s933_s21   ;;  %s737_s20 = sphi %s782_s20, %s932_s20   ;;  %s733_s19 = sphi %s780_s19, %s931_s19   ;;  %s729_s18 = sphi %s778_s18, %s930_s18  }
   0x4   : > { %s801_s24 = sadd.s32 1, %s741_s21   ;;  %s25_s25 = sadd.s32 1, %s737_s20 }
   0x5   : > { %s22_s26 = ssub.s32 %s741_s21, %s801_s24  ;;  %p32_p0 = scmp.ne.s32.totalorder %s737_s20, %s733_s19 }
   0x6   : > { %p23_p1 = scmp.eq.s32.totalorder %s22_s26, 0  ;;  %p33_p2 = scmp.eq.s32.totalorder %s741_s21, 0 }
   0x7   : > { %p146_p3 = scmp.eq.s32.totalorder %s570_s22, 1  ;;  %p151_p4 = scmp.ne.s32.totalorder %s733_s19, %s729_s18 }
   0x8   : > { %s814_s27 = scalar_select %p23_p1, %s737_s20, %s25_s25  }
   0x9   : > { %p34_p5 = por %p33_p2, %p32_p0  ;;  %p816_p6 = por %p146_p3, %p32_p0 }
   0xa   : > { %p152_p7 = scmp.eq.s32.totalorder %s571_s23, 1  ;;  %p573_p9 = scmp.ge.s32.totalorder %s741_s21, 2 }
   0xc   : > { %p820_p8 = por %p152_p7, %p151_p4  ;;  %180 = sbr.rel (%p573_p9) target bundleno = 26 (0x1a), region = 32 }
  0x13   : > { %183 = sbr.rel (!%p34_p5) target bundleno = 26 (0x1a), region = 36  ;;  %s185_s30 = sand.u32 (%p34_p5), 1, %s737_s20  }
  0x14   : > { %s575_s6 = sshll.u32 (%p34_p5), %s741_s21, 3  ;;  %s574_s7 = sshll.u32 (%p34_p5), %s185_s30, 4 }
  0x15   : > { %s189_s10 = scalar_lea.vmem (%p34_p5), %s922_s0, %s575_s6  ;;  %s187_s11 = scalar_lea.vmem (%p34_p5), [#allocation2], %s574_s7 }
  0x16   : > { %v219_v0 = vld [vmem:[%s189_s10] sm:$0xff] (%p34_p5)  ;;  %v221_v1 = vld [vmem:[%s189_s10 + $0x10] sm:$0xff] (%p34_p5) }
  0x17   : > { %220 = vst [vmem:[%s187_s11] sm:$0xff] (%p34_p5), %v219_v0  ;;  %222 = vst [vmem:[%s187_s11 + $0x8] sm:$0xff] (%p34_p5), %v221_v1 }
  0x1a PF: > { %p576_p10 = scmp.ge.s32.totalorder %s741_s21, 1  ;;  %p227_p11 = scmp.lt.s32.totalorder %s741_s21, 3 }
  0x1c   : > { %p228_p12 = pnand %p576_p10, %p227_p11 }
  0x1d   : > { %s835_s12 = sand.u32 (!%p228_p12), 1, %s733_s19   ;;  %v263_v2 = vld [vmem:[%s923_s1] sm:$0xff] (!%p228_p12)  ;;  %vm291_vm0 = vcmask (!%p228_p12), 130048   ;;  %v743_v3 = vmov (!%p228_p12), 0   ;;  %v269_v5 = vld [vmem:[%s924_s2 + $0x10] sm:$0xff] (!%p228_p12)  ;;  %v268_v8 = vld [vmem:[%s924_s2 + $0x8] sm:$0xff] (!%p228_p12) }
  0x1e   : > { %231 = sbr.rel (%p228_p12) target bundleno = 545 (0x221), region = 74  ;;  %s577_s15 = sshll.u32 (!%p228_p12), %s835_s12, 4  ;;  %603 = vmatprep.mubr.msk.f32.mxu0 (!%p228_p12), %vm291_vm0, %v263_v2  ;;  %673 = vset.pattern.permute.xlu0 (!%p228_p12), %v743_v3  ;;  %v267_v4 = vld [vmem:[%s924_s2] sm:$0xff] (!%p228_p12)  ;;  %v270_v10 = vld [vmem:[%s924_s2 + $0x18] sm:$0xff] (!%p228_p12)  ;;  %v264_v11 = vld [vmem:[%s923_s1 + $0x8] sm:$0xff] (!%p228_p12)  ;;  %v744_v15 = vmov (!%p228_p12), 0.0|0.0  }
  0x1f   : > { %273 = vperm.xlu0 (!%p228_p12), %673, %v267_v4   ;;  %674 = vset.pattern.permute.xlu1 (!%p228_p12), %v743_v3  ;;  %s236_s26 = scalar_lea.vmem (!%p228_p12), [#allocation2], %s577_s15  ;;  %v394_v12 = vld [vmem:[%s926_s4] sm:$0xff] (!%p228_p12)  ;;  %v265_v13 = vld [vmem:[%s923_s1 + $0x10] sm:$0xff] (!%p228_p12)  ;;  %v266_v14 = vld [vmem:[%s923_s1 + $0x18] sm:$0xff] (!%p228_p12)  ;;  %vm745_vm1 = vmmov (!%p228_p12), 0   ;;  %v746_v16 = vmov (!%p228_p12), 0.0  }
  0x20   : > { %v261_v6 = vld [vmem:[%s236_s26] sm:$0xff] (!%p228_p12)  ;;  %v262_v7 = vld [vmem:[%s236_s26 + $0x8] sm:$0xff] (!%p228_p12)  ;;  %283 = vperm.xlu1 (!%p228_p12), %674, %v269_v5   ;;  %624 = vmatprep.subr.bf16.mxu1 (!%p228_p12), %v744_v15  ;;  %vm400_vm2 = vcmask (!%p228_p12), 261120   ;;  %s578_s26 = sshll.u32 (!%p228_p12), %s835_s12, 3  ;;  %s585_s30 = sshll.u32 (!%p228_p12), %s570_s22, 7 }
  0x21   : > { %v620_v9 = vpack.c.bf16 (!%p228_p12), %v262_v7, %v261_v6  ;;  %617 = vmatprep.mubr.msk.f32.mxu1 (!%p228_p12), %vm745_vm1, %v746_v16  ;;  %v393_v35 = vld [vmem:[%s925_s3] sm:$0xff] (!%p228_p12)  ;;  %s260_s6 = scalar_lea.vmem (!%p228_p12), [#allocation3], %s578_s26  ;;  %s878_s10 = scalar_lea.hbm (!%p228_p12), %s927_s5, %s585_s30 }
  0x22   : > { %s506_s7 = sshll.u32 (!%p228_p12), %s260_s6, 4  ;;  %s493_s11 = scalar_lea.sflag (!%p228_p12), [#allocation4], %s835_s12  ;;  %s880_s7 = int_to_ptr.vmem [resolvable:$true] %s506_s7 }
  0x23   : > { %621 = vmatprep.subr.bf16.mxu0 (!%p228_p12), %v620_v9  ;;  %278 = vperm.xlu0 (!%p228_p12), %673, %v268_v8   ;;  %s679_s13 = scalar_lea.vmem (!%p228_p12), %s880_s7, 128  ;;  %s747_s22 = smov (!%p228_p12), [#allocation3]  }
  0x24   : > { %623 = vmatpush3.bf16.msra.mxu0 (!%p228_p12), %v620_v9  ;;  %288 = vperm.xlu1 (!%p228_p12), %674, %v270_v10   ;;  %p680_p13 = scmp.ne.s32.totalorder (!%p228_p12), %s880_s7, %s679_s13  ;;  %s683_s14 = sshll.u32 (!%p228_p12), %s747_s22, 4  ;;  %s684_s14 = int_to_ptr.vmem [resolvable:$false] %s683_s14 }
  0x25   : > { %s685_s15 = scalar_lea.vmem %s684_s14, 256  ;;  %p686_p2 = scmp.lt.s32.totalorder %s880_s7, %s684_s14 }
  0x26   : > { %p681_p0 = pnand %p680_p13, %p816_p6  ;;  %p687_p3 = scmp.lt.s32.totalorder %s685_s15, %s679_s13 }
  0x27   : > { %604 = vmatmul.mubr.msk.f32.vlgmr.msra.gmra.mrb[0].mxu0 %vm291_vm0, %v264_v11  ;;  %397 = vperm.xlu0 %673, %v394_v12  }
  0x28   : > { %606 = vmatprep.mubr.msk.f32.mxu0 %vm291_vm0, %v265_v13  ;;  %p682_p1 = pneg %p681_p0  ;;  %p688_p4 = por %p687_p3, %p686_p2 }
  0x2a   : > { %p689_p5 = pnand %p688_p4, %p682_p1 }
  0x2b   : > { %607 = vmatmul.mubr.msk.f32.gmra.mrb[2].mxu0 %vm291_vm0, %v266_v14 }
  0x9e   : > { %v274_v17 = vpop.permute.xlu0 %273 }
  0x9f   : > { %v284_v18 = vpop.permute.xlu1 %283 }
  0xa2   : > { %v279_v19 = vpop.permute.xlu0 %278 }
  0xa3   : > { %v289_v25 = vpop.permute.xlu1 %288 }
  0xa6   : > { %v398_v36 = vpop.permute.xlu0 %397 }
  0xfa   : > { %v605_v20 = vpop.f32.mrb[0].mxu0 }
  0xfb   : > { %v376_v21 = vadd.f32 %v605_v20, %v279_v19  ;;  %v370_v22 = vpop.f32.mrb[1].mxu0 }
  0xfc   : > { %v371_v23 = vadd.f32 %v370_v22, %v274_v17 }
  0xfd   : > { %v390_v24 = vmax.f32 %v376_v21, 0.0 }
  0xfe   : > { %v389_v26 = vmax.f32 %v371_v23, 0.0  ;;  %v608_v27 = vpop.f32.mrb[2].mxu0 }
  0xff   : > { %v386_v28 = vadd.f32 %v608_v27, %v289_v25  ;;  %v380_v29 = vpop.f32.mrb[3].mxu0 }
 0x100   : > { %v381_v30 = vadd.f32 %v380_v29, %v284_v18  ;;  %v625_v31 = vpack.c.bf16 %v390_v24, %v389_v26 }
 0x101   : > { %v392_v32 = vmax.f32 %v386_v28, 0.0 }
 0x102   : > { %v391_v33 = vmax.f32 %v381_v30, 0.0  ;;  %626 = vmatpush3.bf16.msra.mxu1 %v625_v31 }
 0x103   : > { %627 = vmatprep.subr.bf16.mxu1 %v744_v15 }
 0x104   : > { %v628_v34 = vpack.c.bf16 %v392_v32, %v391_v33 }
 0x106   : > { %629 = vmatpush3.bf16.msra.mxu1 %v628_v34 }
 0x109   : > { %618 = vmatmul.mubr.msk.f32.vlgmr.msra.gmra.mrb[0].mxu1 %vm400_vm2, %v393_v35 }
 0x1dc   : > { %v470_v37 = vpop.f32.mrb[0].mxu1 }
 0x1dd   : > { %v471_v38 = vadd.f32 %v470_v37, %v398_v36  ;;  %v619_v39 = vpop.f32.mrb[1].mxu1 }
 0x1df   : > { %v474_v40 = vrot.slane %v471_v38, 4 }
 0x1e1   : > { %v475_v41 = vmax.f32 %v471_v38, %v474_v40 }
 0x1e3   : > { %v476_v42 = vrot.slane %v475_v41, 2 }
 0x1e5   : > { %v477_v43 = vmax.f32 %v475_v41, %v476_v42 }
 0x1e7   : > { %v478_v44 = vrot.slane %v477_v43, 1 }
 0x1e9   : > { %v479_v45 = vmax.f32 %v477_v43, %v478_v44 }
 0x1eb   : > { %v480_v46 = vsub.f32 %v471_v38, %v479_v45 }
 0x1ed   : > { %v481_v47 = vmul.f32 1.442695, %v480_v46 }
 0x1ef   : > { %675 = vpow2.f32 %v481_v47 }
 0x1f9   : > { %v676_v48 = vpop.eup %675 }
 0x1fa   : > { %v483_v49 = vrot.slane %v676_v48, 4 }
 0x1fc   : > { %v484_v50 = vadd.f32 %v676_v48, %v483_v49 }
 0x1fe   : > { %v485_v51 = vrot.slane %v484_v50, 2 }
 0x200   : > { %v486_v52 = vadd.f32 %v485_v51, %v484_v50 }
 0x202   : > { %v487_v53 = vrot.slane %v486_v52, 1 }
 0x204   : > { %v488_v54 = vadd.f32 %v487_v53, %v486_v52 }
 0x206   : > { %677 = vrcp.f32 %v488_v54 }
 0x210   : > { %v678_v55 = vpop.eup %677 }
 0x211   : > { %v490_v56 = vmul.f32 %v678_v55, %v676_v48 }
 0x213   : > { %491 = vst [vmem:[%s260_s6] sm:$0xff] %v490_v56 }
 0x214   : > { %692 = shalt.err (!%p689_p5)
}
 0x215   : > { %s693_s12 = scalar_lea.hbm %s878_s10, 128  ;;  %s697_s23 = scalar_lea.hbm %s927_s5, 256 }
 0x216   : > { %p694_p7 = scmp.ne.s32.totalorder %s878_s10, %s693_s12  ;;  %p698_p12 = scmp.lt.u32.totalorder %s878_s10, %s927_s5 }
 0x217   : > { %p699_p13 = scmp.lt.u32.totalorder %s697_s23, %s693_s12  ;;  %p701_p1 = scmp.lt.u32.totalorder %s693_s12, %s878_s10 }
 0x218   : > { %p695_p10 = pnand %p694_p7, %p816_p6 }
 0x219   : > { %p700_p0 = por %p699_p13, %p698_p12 }
 0x21a   : > { %p696_p11 = pneg %p695_p10 }
 0x21b   : > { %p702_p2 = por %p701_p1, %p700_p0 }
 0x21d   : > { %p703_p3 = pnand %p702_p2, %p696_p11 }
 0x21f   : > { %706 = shalt.err (!%p703_p3)
}
 0x220   : > { %630 = dma.vmem_to_hbm [thread:$0]  (%p816_p6), %s880_s7, 128, %s878_s10, %s493_s11  }
 0x221 PF: > { %s518_s30 = sand.u32 1, %s729_s18   ;;  %p633_p4 = pnand %p573_p9, %p820_p8 }
 0x222   : > { %s519_s6 = scalar_lea.sflag [#allocation4], %s518_s30 }
 0x223   : > { %724 = dma.done.wait (!%p633_p4), %s519_s6, 128  }
 0x224   : > { %726 = vsyncadd (!%p633_p4), %s519_s6, 4294967168  ;;  %p15_p5 = scmp.ge.s32.totalorder %s801_s24, 4   ;;  %s930_s18 = smov %s733_s19 }
 0x225   : > { %s931_s19 = smov %s737_s20  ;;  %s932_s20 = smov %s814_s27 }
 0x226   : > { %s933_s21 = smov %s801_s24  ;;  %17 = sbr.rel (!%p15_p5) target bundleno = 3 (0x3), region = 118 }
 0x22d   :  { %524 = vsyncpa [#allocation4], 1 }
 0x22e   :  { %526 = vsyncpa [#allocation4 + $0x1], 1 }

</bundles_post_ra>
